<compile_context>
chip_gen: v6e
topology: v6e:2x2x1
jax: 0.10.0
libtpu: 0.0.40
codegen_flags: <defaults>
</compile_context>

<pallas_src>
import math

import numpy as np
import jax
import jax.numpy as jnp
from jax.experimental import pallas as pl
from jax.experimental.pallas import tpu as pltpu


def construct_H(group: int) -> jnp.ndarray:
    """Normalized Hadamard matrix (group, group), same recursion as PyTorch."""
    assert group >= 1 and (group & (group - 1)) == 0, "group must be a power of two"
    H = np.ones((1, 1), dtype=np.float32)
    for _ in range(int(math.log2(group))):
        H = np.block([[H, H], [H, -H]]) / math.sqrt(2)
    assert H.shape[0] == group
    return jnp.asarray(H)


def make_householder_params(group: int, dim: int) -> jnp.ndarray:
    """H_group repeated dim//group times -> (dim//group, group, group)."""
    Hg = construct_H(group)
    return jnp.tile(Hg[None], (dim // group, 1, 1))


def _hh_block_diag_kernel(x_ref, w_ref, o_ref):
    # (tm, tn) @ (tn, tn) on the MXU; w_ref holds only this column tile's
    # diagonal slab of the block-diagonal weight.
    o_ref[...] = jnp.dot(
        x_ref[...], w_ref[0], preferred_element_type=jnp.float32
    ).astype(o_ref.dtype)


def _round_up(x: int, m: int) -> int:
    return ((x + m - 1) // m) * m


def _pick_col_tile(dim: int, group: int) -> int:
    # Lane-dense column tile: multiple of 128 and of `group`, dividing dim.
    if dim % 128 == 0:
        tn = 128
        while tn % group:          # only triggers if group > 128 (power of two)
            tn *= 2
        return min(tn, dim)
    return dim                      # small / non-lane-dense dims: one column tile


def _pick_row_tile(M: int, tn: int, itemsize: int) -> int:
    # Target ~2 MiB x tiles (large tiles => ~85% of HBM roofline), clamp to M.
    target_bytes = 2 * 1024 * 1024
    tm = max(8, min(4096, target_bytes // (tn * itemsize)))
    tm = min(tm, _round_up(M, 8))
    return _round_up(tm, 8)


def householder_multiply(x, H, group: int, dim: int):
    """Applies out[..., b, :] = x[..., b, :] @ H[b] for each group-block b."""
    assert group >= 1 and (group & (group - 1)) == 0, "group must be a power of two"
    assert dim % group == 0, "dim must be divisible by group"
    assert x.size % dim == 0, "x cannot be viewed as (..., dim)"
    nb = dim // group
    assert H.shape == (nb, group, group)

    x_shape = x.shape
    xf = x.reshape(-1, dim)
    M = xf.shape[0]

    tn = _pick_col_tile(dim, group)
    tm = _pick_row_tile(M, tn, xf.dtype.itemsize)
    n_cols = dim // tn
    n_rows = pl.cdiv(M, tm)

    # Build only the diagonal (tn, tn) slabs of the block-diagonal weight:
    # dim*tn elements total instead of dim**2 for a dense matrix.
    gpb = tn // group                                   # group-blocks per column tile
    Hc = H.reshape(n_cols, gpb, group, group)
    eye = jnp.eye(gpb, dtype=H.dtype)
    # W[j, a*g + r, c*g + s] = (a == c) * H[j*gpb + a, r, s]
    W = jnp.einsum("ac,jars->jarcs", eye, Hc).reshape(n_cols, tn, tn).astype(xf.dtype)

    out = pl.pallas_call(
        _hh_block_diag_kernel,
        out_shape=jax.ShapeDtypeStruct((M, dim), x.dtype),
        grid_spec=pltpu.PrefetchScalarGridSpec(
            num_scalar_prefetch=0,
            # Column blocks outer => each weight slab is DMA'd once and reused
            # across all row tiles; rows inner stream x/out exactly once.
            grid=(n_cols, n_rows),
            in_specs=[
                pl.BlockSpec((tm, tn), lambda j, i: (i, j)),        # x row/col tile
                pl.BlockSpec((1, tn, tn), lambda j, i: (j, 0, 0)),  # diagonal W slab
            ],
            out_specs=pl.BlockSpec((tm, tn), lambda j, i: (i, j)),
        ),
        compiler_params=pltpu.CompilerParams(
            dimension_semantics=("parallel", "parallel"),
        ),
    )(xf, W)

    return out.reshape(x_shape)


def _reference(x, H, group: int, dim: int):
    return jnp.einsum(
        "...bg,bgh->...bh",
        x.reshape(x.shape[:-1] + (dim // group, group)),
        H,
    ).reshape(x.shape)


if __name__ == "__main__":
    key = jax.random.PRNGKey(0)
    k1, k2 = jax.random.split(key)

    # Test 1: the module's toy configuration (hidden=32, group=4).
    group, dim = 4, 32
    H = make_householder_params(group, dim)          # (8, 4, 4)
    x = jax.random.normal(k1, (2, 8, dim), dtype=jnp.float32)
    y = householder_multiply(x, H, group, dim)
    jax.block_until_ready(y)
    assert jnp.allclose(y, _reference(x, H, group, dim), atol=1e-5), "mismatch (dim=32)"

    # Test 2: lane-dense path (dim multiple of 128), multiple column tiles,
    # and a ragged row count (M=21) exercising the masked last row tile.
    group2, dim2 = 4, 256
    H2 = make_householder_params(group2, dim2)       # (64, 4, 4)
    x2 = jax.random.normal(k2, (3, 7, dim2), dtype=jnp.float32)
    y2 = householder_multiply(x2, H2, group2, dim2)
    jax.block_until_ready(y2)
    assert jnp.allclose(y2, _reference(x2, H2, group2, dim2), atol=1e-5), "mismatch (dim=256)"

    print("KERNEL_OK")
</pallas_src>

<mosaic_0001>
module attributes {stable_mosaic.version = 11 : i64} {
  func.func @_hh_block_diag_kernel(%arg0: i32, %arg1: i32, %arg2: memref<16x32xf32, #tpu.memory_space<vmem>>, %arg3: memref<1x32x32xf32, #tpu.memory_space<vmem>>, %arg4: memref<16x32xf32, #tpu.memory_space<vmem>>) attributes {dimension_semantics = [#tpu.dimension_semantics<parallel>, #tpu.dimension_semantics<parallel>], iteration_bounds = array<i64: 1, 1>, scalar_prefetch = 0 : i64, scratch_operands = 0 : i64, tpu.core_type = #tpu.core_type<tc>, window_params = [{transform_indices = @transform_0, window_bounds = array<i64: 16, 32>}, {transform_indices = @transform_1, window_bounds = array<i64: 1, 32, 32>}, {transform_indices = @transform_2, window_bounds = array<i64: 16, 32>}]} {
    %c0 = arith.constant 0 : index
    %c0_0 = arith.constant 0 : index
    %0 = vector.load %arg2[%c0, %c0_0] : memref<16x32xf32, #tpu.memory_space<vmem>>, vector<16x32xf32>
    %c0_1 = arith.constant 0 : index
    %c0_2 = arith.constant 0 : index
    %c0_3 = arith.constant 0 : index
    %1 = vector.load %arg3[%c0_1, %c0_2, %c0_3] : memref<1x32x32xf32, #tpu.memory_space<vmem>>, vector<1x32x32xf32>
    %2 = vector.shape_cast %1 : vector<1x32x32xf32> to vector<32x32xf32>
    %cst = arith.constant dense<0.000000e+00> : vector<16x32xf32>
    %3 = tpu.matmul %0, %2, %cst {dimension_numbers = #tpu.dot_dimension_numbers<[1], [0], [0], [1], [0, 0, 1, 1], [], []>} : vector<16x32xf32>, vector<32x32xf32>, vector<16x32xf32> -> vector<16x32xf32>
    %c0_4 = arith.constant 0 : index
    %c0_5 = arith.constant 0 : index
    %4 = vector.load %arg4[%c0_4, %c0_5] : memref<16x32xf32, #tpu.memory_space<vmem>>, vector<16x32xf32>
    tpu.vector_store %arg4[%c0_4, %c0_5], %3 {strides = array<i32>} : memref<16x32xf32, #tpu.memory_space<vmem>>, vector<16x32xf32>,
    return
  }
  func.func @transform_0(%arg0: i32, %arg1: i32) -> (i32, i32) {
    %c0_i32 = arith.constant 0 : i32
    return %arg1, %arg0 : i32, i32
  }
  func.func @transform_1(%arg0: i32, %arg1: i32) -> (i32, i32, i32) {
    %c0_i32 = arith.constant 0 : i32
    %c0_i32_0 = arith.constant 0 : i32
    %c0_i32_1 = arith.constant 0 : i32
    return %arg0, %c0_i32, %c0_i32_0 : i32, i32, i32
  }
  func.func @transform_2(%arg0: i32, %arg1: i32) -> (i32, i32) {
    %c0_i32 = arith.constant 0 : i32
    return %arg1, %arg0 : i32, i32
  }
}

</mosaic_0001>

<bundles_post_ra>
// kernel: tpu_custom_call.1
= control target key start
LH: loop header
LB: loop body
LE: loop exit
PB: predicated region body
PF: predicated region fallthrough
CT: control target
= control target key end

     0   :  { %7 = vsyncpa [#allocation3], 0  ;;  %s280_s0 = inlined_call_operand.hbm [shape: f32[16,32], index: 0, kind: input, shape index: {}]   ;;  %s281_s1 = inlined_call_operand.hbm [shape: f32[1,32,32], index: 1, kind: input, shape index: {}]   ;;  %s282_s2 = inlined_call_operand.hbm [shape: f32[16,32], index: 2, kind: output, shape index: {}]  }
   0x1   :  { %8 = vsyncpa [#allocation6], 0 }
   0x2   :  { %9 = vsyncpa [#allocation4], 0  ;;  %s238_s9 = smov [#allocation2]  }
   0x3   :  { %s15_s10 = sshll.u32 %s238_s9, 4  ;;  %s16_s10 = int_to_ptr.vmem [resolvable:$true] %s15_s10 }
   0x4   :  { %s180_s11 = scalar_lea.vmem %s16_s10, 256  ;;  %p185_p1 = scmp.lt.s32.totalorder %s16_s10, %s16_s10 }
   0x5   :  { %p181_p0 = scmp.ne.s32.totalorder %s16_s10, %s180_s11  ;;  %p186_p2 = scmp.lt.s32.totalorder %s180_s11, %s180_s11 }
   0x7   :  { %p187_p3 = por %p186_p2, %p185_p1 }
   0x9   :  { %p188_p4 = pnand %p187_p3, %p181_p0 }
   0xb   :  { %191 = shalt.err (!%p188_p4)
}
   0xc   :  { %s239_s12 = smov 128   ;;  %s240_s13 = smov 8  }
   0xd   :  { %21 = dma.hbm_to_vmem [thread:$0]  %s280_s0, 256, %s16_s10, [#allocation3], %s239_s12, %s239_s12, %s240_s13  }
   0xe   :  { %s241_s16 = smov [#allocation5]  }
   0xf   :  { %s27_s17 = sshll.u32 %s241_s16, 4  ;;  %s28_s17 = int_to_ptr.vmem [resolvable:$true] %s27_s17 }
  0x10   :  { %s200_s18 = scalar_lea.vmem %s28_s17, 512  ;;  %p205_p6 = scmp.lt.s32.totalorder %s28_s17, %s28_s17 }
  0x11   :  { %p201_p5 = scmp.ne.s32.totalorder %s28_s17, %s200_s18  ;;  %p206_p7 = scmp.lt.s32.totalorder %s200_s18, %s200_s18 }
  0x13   :  { %p207_p8 = por %p206_p7, %p205_p6 }
  0x15   :  { %p208_p9 = pnand %p207_p8, %p201_p5 }
  0x17   :  { %211 = shalt.err (!%p208_p9)
}
  0x18   :  { %33 = dma.hbm_to_vmem [thread:$0]  %s281_s1, 512, %s28_s17, [#allocation6], %s239_s12, %s239_s12, %s240_s13  }
  0x19   :  { %232 = dma.done.wait [#allocation3], 256  }
  0x1a   :  { %233 = vsyncadd [#allocation3], 4294967040 }
  0x1b   :  { %234 = dma.done.wait [#allocation6], 512  }
  0x1c   :  { %235 = vsyncadd [#allocation6], 4294966784  ;;  %vm46_vm0 = vcmask 261120   ;;  %v45_v0 = vld [vmem:[#allocation5 + $0x18] sm:$0xff]  ;;  %v44_v1 = vld [vmem:[#allocation5 + $0x10] sm:$0xff]  ;;  %s242_s0 = smov [#allocation7]  }
  0x1d   :  { %156 = vmatprep.subr.mxu0 %v45_v0  ;;  %v40_v2 = vld [vmem:[#allocation2] sm:$0xff]  ;;  %v43_v3 = vld [vmem:[#allocation5 + $0x8] sm:$0xff]  ;;  %v42_v4 = vld [vmem:[#allocation5] sm:$0xff]  ;;  %s135_s1 = sshll.u32 %s242_s0, 4  ;;  %s136_s1 = int_to_ptr.vmem [resolvable:$true] %s135_s1 }
  0x1e   :  { %157 = vmatpush3.msra.mxu0 %v45_v0  ;;  %164 = vmatprep.mubr.msk.f32.mxu0 %vm46_vm0, %v40_v2  ;;  %v41_v5 = vld [vmem:[#allocation2 + $0x8] sm:$0xff]  ;;  %s212_s21 = scalar_lea.vmem %s136_s1, 256  ;;  %p217_p11 = scmp.lt.s32.totalorder %s136_s1, %s136_s1 }
  0x1f   :  { %158 = vmatprep.subr.mxu0 %v44_v1  ;;  %p213_p10 = scmp.ne.s32.totalorder %s136_s1, %s212_s21  ;;  %p218_p12 = scmp.lt.s32.totalorder %s212_s21, %s212_s21 }
  0x20   :  { %159 = vmatpush3.msra.mxu0 %v44_v1 }
  0x21   :  { %160 = vmatprep.subr.mxu0 %v43_v3  ;;  %p219_p13 = por %p218_p12, %p217_p11 }
  0x22   :  { %161 = vmatpush3.msra.mxu0 %v43_v3 }
  0x23   :  { %162 = vmatprep.subr.mxu0 %v42_v4  ;;  %p220_p0 = pnand %p219_p13, %p213_p10 }
  0x24   :  { %163 = vmatpush3.msra.mxu0 %v42_v4 }
  0x25   :  { %165 = vmatmul.mubr.msk.f32.vlgmr.msra.gmra.mxu0 %vm46_vm0, %v41_v5 }
  0xe5   :  { %v166_v6 = vpop.f32.mrf.mxu0 }
  0xe6   :  { %129 = vst.msk [vmem:[#allocation7 + $0x8] sm:$0xff] %vm46_vm0, %v166_v6 }
  0xe7   :  { %v119_v7 = vpop.f32.mrf.mxu0 }
  0xe8   :  { %128 = vst.msk [vmem:[#allocation7] sm:$0xff] %vm46_vm0, %v119_v7 }
  0xe9   :  { %223 = shalt.err (!%p220_p0)
}
  0xea   :  { %141 = dma.vmem_to_hbm [thread:$0]  %s136_s1, 256, %s282_s2, [#allocation4], %s239_s12, %s239_s12, %s240_s13  }
  0xeb   :  { %236 = dma.done.wait [#allocation4], 256  }
  0xec   :  { %237 = vsyncadd [#allocation4], 4294967040 }
  0xed   :  { %145 = vsyncpa [#allocation3], 1 }
  0xee   :  { %146 = vsyncpa [#allocation6], 1 }
  0xef   :  { %147 = vsyncpa [#allocation4], 1 }

</bundles_post_ra>
